<compile_context>
chip_gen: v5e
topology: v5e:2x2
jax: 0.10.0
libtpu: 0.0.40
codegen_flags: <defaults>
</compile_context>

<pallas_src>
import jax
import jax.numpy as jnp
from jax import lax
from jax.experimental import pallas as pl
from jax.experimental.pallas import tpu as pltpu


def _vmem_limit_bytes() -> int:
    """~7/8 of physical VMEM: ~112 MiB on v5e/v6e, ~56 MiB on v7x."""
    phys = 64 * 1024 * 1024  # conservative default (v7x per-TC VMEM)
    try:
        # Hardware-capability probe only; never selects a kernel variant.
        phys = int(pltpu.get_tpu_info().vmem_capacity_bytes)
    except Exception:
        pass
    return phys * 7 // 8


def _round_up(x: int, m: int) -> int:
    return ((x + m - 1) // m) * m


def _pick_tile(dim: int, candidates) -> int:
    for c in candidates:
        if c <= dim and dim % c == 0:
            return c
    return dim  # full-extent block is always legal


# ----------------------------------------------------------------------------
# Phase 1: tiled (A @ W + b) GEMM with f32 accumulator (bf16 operands/output).
# ----------------------------------------------------------------------------
def _matmul_bias_kernel(a_ref, w_ref, b_ref, o_ref, acc_ref):
    k = pl.program_id(2)

    @pl.when(k == 0)
    def _():
        acc_ref[...] = jnp.zeros_like(acc_ref)

    acc_ref[...] += jnp.dot(a_ref[...], w_ref[...],
                            preferred_element_type=jnp.float32)

    @pl.when(k == pl.num_programs(2) - 1)
    def _():
        o_ref[...] = (acc_ref[...] + b_ref[...].astype(jnp.float32)
                      ).astype(o_ref.dtype)


def matmul_bias(a, w, b, *, out_dtype, vmem_limit):
    """a: (M, K), w: (K, N), b: (1, N) -> (M, N) in out_dtype."""
    M, K = a.shape
    _, N = w.shape
    bm = _pick_tile(M, (512, 256, 128, 64, 32, 16, 8))
    bn = _pick_tile(N, (512, 256, 128))
    bk = _pick_tile(K, (1024, 512, 256, 128))
    return pl.pallas_call(
        _matmul_bias_kernel,
        out_shape=jax.ShapeDtypeStruct((M, N), out_dtype),
        grid_spec=pltpu.PrefetchScalarGridSpec(
            num_scalar_prefetch=0,
            grid=(M // bm, N // bn, K // bk),
            in_specs=[
                pl.BlockSpec((bm, bk), lambda i, j, k: (i, k)),
                pl.BlockSpec((bk, bn), lambda i, j, k: (k, j)),
                pl.BlockSpec((1, bn), lambda i, j, k: (0, j)),
            ],
            out_specs=pl.BlockSpec((bm, bn), lambda i, j, k: (i, j)),
            scratch_shapes=[pltpu.VMEM((bm, bn), jnp.float32)],
        ),
        compiler_params=pltpu.CompilerParams(
            dimension_semantics=("parallel", "parallel", "arbitrary"),
            vmem_limit_bytes=vmem_limit),
    )(a, w, b)


# ----------------------------------------------------------------------------
# Phase 2 + 3: LSTM recurrence (time loop inside the kernel, h/c in f32 VMEM
# scratch) with the final nn.Linear fused into the last-chunk epilogue.
# ----------------------------------------------------------------------------
def _lstm_recurrence_fused(xproj, whh_t, wlin_t, blin, *, T, Hp, Tc, Bb, nb,
                           mask_tail, unroll, out_dtype, vmem_limit):
    T_pad, B_pad, G4 = xproj.shape
    Op = wlin_t.shape[1]
    n_chunks = T_pad // Tc

    def kernel(xproj_ref, whh_ref, wlin_ref, blin_ref, out_ref, h_sc, c_sc):
        c_idx = pl.program_id(1)

        @pl.when(c_idx == 0)
        def _():
            h_sc[...] = jnp.zeros_like(h_sc)
            c_sc[...] = jnp.zeros_like(c_sc)

        def step(s, carry):
            h, c = carry
            # Input projection precomputed (bf16); recurrent GEMM in bf16 with
            # f32 accumulation.  Gate layout is (i | f | o | g), each Hp wide
            # and lane-aligned (Hp % 128 == 0), so slices are free views.
            gates = xproj_ref[s].astype(jnp.float32) + jnp.dot(
                h.astype(jnp.bfloat16), whh_ref[...],
                preferred_element_type=jnp.float32)            # (Bb, 4*Hp)
            sig = jax.nn.sigmoid(gates[:, 0:3 * Hp])           # i, f, o in one sweep
            g_g = jnp.tanh(gates[:, 3 * Hp:4 * Hp])
            i_g = sig[:, 0:Hp]
            f_g = sig[:, Hp:2 * Hp]
            o_g = sig[:, 2 * Hp:3 * Hp]
            c_new = f_g * c + i_g * g_g                        # f32 state update
            h_new = o_g * jnp.tanh(c_new)
            if mask_tail:                                      # static Python flag
                valid = (c_idx * Tc + s) < T
                c_new = jnp.where(valid, c_new, c)
                h_new = jnp.where(valid, h_new, h)
            return h_new, c_new

        # Static trip count + unroll: lets the LLO scheduler pipeline the body.
        h_f, c_f = lax.fori_loop(0, Tc, step, (h_sc[...], c_sc[...]),
                                 unroll=unroll)
        h_sc[...] = h_f
        c_sc[...] = c_f

        @pl.when(c_idx == n_chunks - 1)
        def _():
            # Fused final nn.Linear on h_T (lane-dense Op output).
            out_ref[...] = (jnp.dot(h_f.astype(jnp.bfloat16), wlin_ref[...],
                                    preferred_element_type=jnp.float32)
                            + blin_ref[...]).astype(out_ref.dtype)

    return pl.pallas_call(
        kernel,
        out_shape=jax.ShapeDtypeStruct((B_pad, Op), out_dtype),
        grid_spec=pltpu.PrefetchScalarGridSpec(
            num_scalar_prefetch=0,
            grid=(nb, n_chunks),
            in_specs=[
                pl.BlockSpec((Tc, Bb, G4), lambda bi, c: (c, bi, 0)),  # X_proj chunk
                pl.BlockSpec((Hp, G4), lambda bi, c: (0, 0)),          # W_hh^T resident
                pl.BlockSpec((Hp, Op), lambda bi, c: (0, 0)),          # W_lin^T resident
                pl.BlockSpec((1, Op), lambda bi, c: (0, 0)),           # b_lin
            ],
            out_specs=pl.BlockSpec((Bb, Op), lambda bi, c: (bi, 0)),
            scratch_shapes=[
                pltpu.VMEM((Bb, Hp), jnp.float32),   # h state (f32)
                pltpu.VMEM((Bb, Hp), jnp.float32),   # c state (f32)
            ],
        ),
        compiler_params=pltpu.CompilerParams(
            # batch-tile axis parallel (uses both v7x TCs); chunk axis sequential
            dimension_semantics=("parallel", "arbitrary"),
            vmem_limit_bytes=vmem_limit),
    )(xproj, whh_t, wlin_t, blin)


# ----------------------------------------------------------------------------
# Wrapper: padding, gate reorder, weight prep (plain JAX glue, one-time).
# ----------------------------------------------------------------------------
def lstm_with_linear(x, w_ih, w_hh, b_ih, b_hh, w_lin, b_lin, *, time_chunk=32):
    """x: (T, B, I) float32.  Returns (1, B, O) to match PyTorch linear(h_T)."""
    T, B, I = x.shape
    H = w_hh.shape[1]
    O = w_lin.shape[0]

    Hp = _round_up(H, 128)          # lane-aligned gate slices
    Op = _round_up(O, 128)          # lane-dense final store
    B_pad = _round_up(B, 8)         # sublane-aligned batch
    vmem_limit = _vmem_limit_bytes()

    # Reorder PyTorch gate blocks (i, f, g, o) -> (i, f, o, g) and pad each
    # gate block from H to Hp rows with zeros.
    def prep_gates(w2d):
        i_w, f_w, g_w, o_w = jnp.split(w2d, 4, axis=0)
        pad = lambda m: jnp.pad(m, ((0, Hp - H), (0, 0)))
        return jnp.concatenate([pad(i_w), pad(f_w), pad(o_w), pad(g_w)], axis=0)

    wih_p = prep_gates(w_ih)                                      # (4Hp, I)
    whh_p = prep_gates(jnp.pad(w_hh, ((0, 0), (0, Hp - H))))      # (4Hp, Hp)
    bias = prep_gates((b_ih + b_hh).reshape(4 * H, 1)).reshape(1, 4 * Hp)
    bias = bias.astype(jnp.float32)

    wih_t = wih_p.T.astype(jnp.bfloat16)                          # (I, 4Hp)
    whh_t = whh_p.T.astype(jnp.bfloat16)                          # (Hp, 4Hp)
    wlin_t = jnp.pad(w_lin, ((0, Op - O), (0, Hp - H))).T.astype(jnp.bfloat16)
    blin = jnp.pad(b_lin, (0, Op - O)).reshape(1, Op).astype(jnp.float32)

    # Pad batch; padded rows are sliced off at the end.
    x_pad = jnp.pad(x, ((0, 0), (0, B_pad - B), (0, 0)))

    # Phase 1: hoisted input projection over all timesteps (bf16 operands/out).
    xproj = matmul_bias(
        x_pad.reshape(T * B_pad, I).astype(jnp.bfloat16), wih_t, bias,
        out_dtype=jnp.bfloat16, vmem_limit=vmem_limit,
    ).reshape(T, B_pad, 4 * Hp)

    # Phase 2+3: recurrence with fused final linear.
    Tc = min(time_chunk, T)
    mask_tail = (T % Tc) != 0
    T_pad = _round_up(T, Tc)
    if T_pad != T:
        # Static time padding: no out-of-bounds blocks; padded steps are
        # predicated out inside the kernel with a cheap select.
        xproj = jnp.pad(xproj, ((0, T_pad - T), (0, 0), (0, 0)))
    nb = 2 if (B_pad % 16 == 0) else 1      # 2 batch tiles -> both v7x cores
    Bb = B_pad // nb
    unroll = 4 if Tc % 4 == 0 else (2 if Tc % 2 == 0 else 1)

    out = _lstm_recurrence_fused(
        xproj, whh_t, wlin_t, blin,
        T=T, Hp=Hp, Tc=Tc, Bb=Bb, nb=nb, mask_tail=mask_tail,
        unroll=unroll, out_dtype=x.dtype, vmem_limit=vmem_limit)

    return out[:B, :O].reshape(1, B, O)


# ----------------------------------------------------------------------------
# Pure-JAX reference matching PyTorch nn.LSTM + nn.Linear (f32 throughout).
# ----------------------------------------------------------------------------
def reference(x, w_ih, w_hh, b_ih, b_hh, w_lin, b_lin):
    T, B, I = x.shape
    H = w_hh.shape[1]

    def step(carry, x_t):
        h, c = carry
        gates = x_t @ w_ih.T + b_ih + h @ w_hh.T + b_hh
        i_g, f_g, g_g, o_g = jnp.split(gates, 4, axis=-1)
        i_g = jax.nn.sigmoid(i_g)
        f_g = jax.nn.sigmoid(f_g)
        g_g = jnp.tanh(g_g)
        o_g = jax.nn.sigmoid(o_g)
        c = f_g * c + i_g * g_g
        h = o_g * jnp.tanh(c)
        return (h, c), None

    h0 = jnp.zeros((B, H), jnp.float32)
    c0 = jnp.zeros((B, H), jnp.float32)
    (h_T, _), _ = lax.scan(step, (h0, c0), x)
    return (h_T @ w_lin.T + b_lin)[None, :, :]


if __name__ == "__main__":
    # Small shapes consistent with the module.
    seq_len, batch = 8, 4
    input_size, hidden_size, output_size = 16, 32, 8

    key = jax.random.PRNGKey(0)
    ks = jax.random.split(key, 8)
    bound = 1.0 / jnp.sqrt(hidden_size)   # PyTorch default init range

    x = jax.random.normal(ks[0], (seq_len, batch, input_size), jnp.float32)
    w_ih = jax.random.uniform(ks[1], (4 * hidden_size, input_size),
                              jnp.float32, -bound, bound)
    w_hh = jax.random.uniform(ks[2], (4 * hidden_size, hidden_size),
                              jnp.float32, -bound, bound)
    b_ih = jax.random.uniform(ks[3], (4 * hidden_size,), jnp.float32, -bound, bound)
    b_hh = jax.random.uniform(ks[4], (4 * hidden_size,), jnp.float32, -bound, bound)
    w_lin = jax.random.uniform(ks[5], (output_size, hidden_size),
                               jnp.float32, -bound, bound)
    b_lin = jax.random.uniform(ks[6], (output_size,), jnp.float32, -bound, bound)

    out = lstm_with_linear(x, w_ih, w_hh, b_ih, b_hh, w_lin, b_lin)
    out = jax.block_until_ready(out)

    ref = reference(x, w_ih, w_hh, b_ih, b_hh, w_lin, b_lin)
    assert out.shape == (1, batch, output_size), out.shape
    # bf16 MXU operands (f32 state/accumulation) vs f32 reference -> ~1e-3 err.
    max_err = jnp.max(jnp.abs(out - ref))
    assert jnp.allclose(out, ref, atol=2e-2, rtol=2e-2), \
        f"max abs err {max_err}"

    print("KERNEL_OK")
</pallas_src>

<mosaic_0001>
module attributes {stable_mosaic.version = 11 : i64} {
  func.func @_matmul_bias_kernel(%arg0: i32, %arg1: i32, %arg2: i32, %arg3: memref<64x16xbf16, #tpu.memory_space<vmem>>, %arg4: memref<16x512xbf16, #tpu.memory_space<vmem>>, %arg5: memref<1x512xf32, #tpu.memory_space<vmem>>, %arg6: memref<64x512xbf16, #tpu.memory_space<vmem>>, %arg7: memref<64x512xf32, #tpu.memory_space<vmem>>) attributes {dimension_semantics = [#tpu.dimension_semantics<parallel>, #tpu.dimension_semantics<parallel>, #tpu.dimension_semantics<arbitrary>], iteration_bounds = array<i64: 1, 1, 1>, scalar_prefetch = 0 : i64, scratch_operands = 1 : i64, tpu.core_type = #tpu.core_type<tc>, window_params = [{transform_indices = @transform_0, window_bounds = array<i64: 64, 16>}, {transform_indices = @transform_1, window_bounds = array<i64: 16, 512>}, {transform_indices = @transform_2, window_bounds = array<i64: 1, 512>}, {transform_indices = @transform_3, window_bounds = array<i64: 64, 512>}]} {
    %c0_i32 = arith.constant 0 : i32
    %0 = arith.cmpi eq, %arg2, %c0_i32 : i32
    %1 = arith.extui %0 : i1 to i32
    %c0_i32_0 = arith.constant 0 : i32
    %2 = arith.cmpi ne, %1, %c0_i32_0 : i32
    scf.if %2 {
      %cst_10 = arith.constant 0.000000e+00 : f32
      %12 = vector.broadcast %cst_10 : f32 to vector<64x512xf32>
      %c0_11 = arith.constant 0 : index
      %c0_12 = arith.constant 0 : index
      %13 = vector.load %arg7[%c0_11, %c0_12] : memref<64x512xf32, #tpu.memory_space<vmem>>, vector<64x512xf32>
      tpu.vector_store %arg7[%c0_11, %c0_12], %12 {strides = array<i32>} : memref<64x512xf32, #tpu.memory_space<vmem>>, vector<64x512xf32>,
    } else {
    }
    %c0 = arith.constant 0 : index
    %c0_1 = arith.constant 0 : index
    %3 = vector.load %arg7[%c0, %c0_1] : memref<64x512xf32, #tpu.memory_space<vmem>>, vector<64x512xf32>
    %c0_2 = arith.constant 0 : index
    %c0_3 = arith.constant 0 : index
    %4 = vector.load %arg3[%c0_2, %c0_3] : memref<64x16xbf16, #tpu.memory_space<vmem>>, vector<64x16xbf16>
    %c0_4 = arith.constant 0 : index
    %c0_5 = arith.constant 0 : index
    %5 = vector.load %arg4[%c0_4, %c0_5] : memref<16x512xbf16, #tpu.memory_space<vmem>>, vector<16x512xbf16>
    %cst = arith.constant dense<0.000000e+00> : vector<64x512xf32>
    %6 = tpu.matmul %4, %5, %cst {dimension_numbers = #tpu.dot_dimension_numbers<[1], [0], [0], [1], [0, 0, 1, 1], [], []>} : vector<64x16xbf16>, vector<16x512xbf16>, vector<64x512xf32> -> vector<64x512xf32>
    %7 = arith.addf %3, %6 : vector<64x512xf32>
    %c0_6 = arith.constant 0 : index
    %c0_7 = arith.constant 0 : index
    %8 = vector.load %arg7[%c0_6, %c0_7] : memref<64x512xf32, #tpu.memory_space<vmem>>, vector<64x512xf32>
    tpu.vector_store %arg7[%c0_6, %c0_7], %7 {strides = array<i32>} : memref<64x512xf32, #tpu.memory_space<vmem>>, vector<64x512xf32>,
    %c0_i32_8 = arith.constant 0 : i32
    %9 = arith.cmpi eq, %arg2, %c0_i32_8 : i32
    %10 = arith.extui %9 : i1 to i32
    %c0_i32_9 = arith.constant 0 : i32
    %11 = arith.cmpi ne, %10, %c0_i32_9 : i32
    scf.if %11 {
      %c0_10 = arith.constant 0 : index
      %c0_11 = arith.constant 0 : index
      %12 = vector.load %arg7[%c0_10, %c0_11] : memref<64x512xf32, #tpu.memory_space<vmem>>, vector<64x512xf32>
      %c0_12 = arith.constant 0 : index
      %c0_13 = arith.constant 0 : index
      %13 = vector.load %arg5[%c0_12, %c0_13] : memref<1x512xf32, #tpu.memory_space<vmem>>, vector<1x512xf32>
      %14 = vector.broadcast %13 : vector<1x512xf32> to vector<64x512xf32>
      %15 = arith.addf %12, %14 : vector<64x512xf32>
      %16 = arith.truncf %15 : vector<64x512xf32> to vector<64x512xbf16>
      %c0_14 = arith.constant 0 : index
      %c0_15 = arith.constant 0 : index
      %17 = vector.load %arg6[%c0_14, %c0_15] : memref<64x512xbf16, #tpu.memory_space<vmem>>, vector<64x512xbf16>
      tpu.vector_store %arg6[%c0_14, %c0_15], %16 {strides = array<i32>} : memref<64x512xbf16, #tpu.memory_space<vmem>>, vector<64x512xbf16>,
    } else {
    }
    return
  }
  func.func @transform_0(%arg0: i32, %arg1: i32, %arg2: i32) -> (i32, i32) {
    %c0_i32 = arith.constant 0 : i32
    return %arg0, %arg2 : i32, i32
  }
  func.func @transform_1(%arg0: i32, %arg1: i32, %arg2: i32) -> (i32, i32) {
    %c0_i32 = arith.constant 0 : i32
    return %arg2, %arg1 : i32, i32
  }
  func.func @transform_2(%arg0: i32, %arg1: i32, %arg2: i32) -> (i32, i32) {
    %c0_i32 = arith.constant 0 : i32
    %c0_i32_0 = arith.constant 0 : i32
    return %c0_i32, %arg1 : i32, i32
  }
  func.func @transform_3(%arg0: i32, %arg1: i32, %arg2: i32) -> (i32, i32) {
    %c0_i32 = arith.constant 0 : i32
    return %arg0, %arg1 : i32, i32
  }
}

</mosaic_0001>

<bundles_post_ra>
// kernel: tpu_custom_call.1
= control target key start
LH: loop header
LB: loop body
LE: loop exit
PB: predicated region body
PF: predicated region fallthrough
CT: control target
= control target key end

     0   :  { %vm136_vm0 = vcmask 130048   ;;  %s662_s0 = inlined_call_operand.vmem [shape: bf16[64,16], index: 0, kind: input, shape index: {}]   ;;  %s663_s1 = inlined_call_operand.vmem [shape: bf16[16,512], index: 1, kind: input, shape index: {}]   ;;  %s664_s2 = inlined_call_operand.vmem [shape: f32[1,512], index: 2, kind: input, shape index: {}]   ;;  %s665_s3 = inlined_call_operand.hbm [shape: bf16[64,512], index: 3, kind: output, shape index: {}]  }
   0x1   :  { %v474_v0 = vld [vmem:[%s663_s1] sm:$0xf]  ;;  %v510_v1 = vld [vmem:[%s663_s1 + $0xc] sm:$0xf0]  ;;  %v508_v2 = vld [vmem:[%s663_s1 + $0x4] sm:$0xf] }
   0x2   :  { %v475_v3 = vor.u32 %v510_v1, %v474_v0  ;;  %v476_v4 = vld [vmem:[%s663_s1 + $0x10] sm:$0xf0]  ;;  %v482_v5 = vld [vmem:[%s663_s1 + $0x8] sm:$0xf]  ;;  %v511_v6 = vld [vmem:[%s663_s1 + $0x14] sm:$0xf0] }
   0x3   :  { %v479_v7 = vor.u32 %v508_v2, %v476_v4  ;;  %v483_v8 = vor.u32 %v511_v6, %v482_v5  ;;  %v509_v9 = vld [vmem:[%s663_s1 + $0xc] sm:$0xf]  ;;  %v484_v10 = vld [vmem:[%s663_s1 + $0x18] sm:$0xf0]  ;;  %v504_v11 = vld [vmem:[%s662_s0] sm:$0xff] }
   0x4   :  { %156 = vmatpush.bf16.msra.mxu0 %v475_v3  ;;  %v487_v12 = vor.u32 %v509_v9, %v484_v10 }
   0x5   :  { %8 = vsyncpa [#allocation4], 0  ;;  %185 = vmatpush.bf16.msra.mxu1 %v479_v7  ;;  %214 = vmatpush.bf16.msra.mxu2 %v483_v8  ;;  %v505_v13 = vld [vmem:[%s662_s0 + $0x8] sm:$0xff]  ;;  %v506_v14 = vld [vmem:[%s662_s0 + $0x10] sm:$0xff]  ;;  %s444_s12 = sshll.u32 %s665_s3, 4  ;;  %s542_s13 = smov 256   ;;  %s445_s12 = int_to_ptr.hbm [resolvable:$true] %s444_s12 }
   0x6   :  { %243 = vmatpush.bf16.msra.mxu3 %v487_v12  ;;  %v507_v15 = vld [vmem:[%s662_s0 + $0x18] sm:$0xff]  ;;  %v364_v16 = vld [vmem:[%s664_s2] sm:$0xf]  ;;  %s541_s0 = smov [#allocation3]   ;;  %s543_s14 = smov 16  }
   0x7   :  { %488 = vmatmul.msk.bf16.vlgmr.msra.gmra.mxu0 %vm136_vm0, %v504_v11  ;;  %v619_v17 = vperm.slane %v364_v16, 0  ;;  %v621_v18 = vperm.slane %v364_v16, 1  ;;  %v625_v24 = vperm.slane %v364_v16, 2  ;;  %v627_v25 = vperm.slane %v364_v16, 3  ;;  %s442_s2 = sshll.u32 %s541_s0, 4  ;;  %s443_s2 = int_to_ptr.vmem [resolvable:$true] %s442_s2 }
   0x8   :  { %492 = vmatmul.msk.bf16.vlgmr.msra.gmra.mxu1 %vm136_vm0, %v504_v11  ;;  %496 = vmatmul.msk.bf16.vlgmr.msra.gmra.mxu2 %vm136_vm0, %v504_v11 }
   0x9   :  { %500 = vmatmul.msk.bf16.vlgmr.msra.gmra.mxu3 %vm136_vm0, %v504_v11 }
  0x17   :  { %489 = vmatmul.msk.bf16.gmra.mxu0 %vm136_vm0, %v505_v13 }
  0x18   :  { %493 = vmatmul.msk.bf16.gmra.mxu1 %vm136_vm0, %v505_v13  ;;  %497 = vmatmul.msk.bf16.gmra.mxu2 %vm136_vm0, %v505_v13 }
  0x19   :  { %501 = vmatmul.msk.bf16.gmra.mxu3 %vm136_vm0, %v505_v13 }
  0x27   :  { %490 = vmatmul.msk.bf16.gmra.mxu0 %vm136_vm0, %v506_v14 }
  0x28   :  { %494 = vmatmul.msk.bf16.gmra.mxu1 %vm136_vm0, %v506_v14  ;;  %498 = vmatmul.msk.bf16.gmra.mxu2 %vm136_vm0, %v506_v14 }
  0x29   :  { %502 = vmatmul.msk.bf16.gmra.mxu3 %vm136_vm0, %v506_v14 }
  0x37   :  { %491 = vmatmul.msk.bf16.gmra.mxu0 %vm136_vm0, %v507_v15 }
  0x38   :  { %495 = vmatmul.msk.bf16.gmra.mxu1 %vm136_vm0, %v507_v15  ;;  %499 = vmatmul.msk.bf16.gmra.mxu2 %vm136_vm0, %v507_v15 }
  0x39   :  { %503 = vmatmul.msk.bf16.gmra.mxu3 %vm136_vm0, %v507_v15 }
  0x84   :  { %v158_v19 = vpop.f32.mrf.mxu0 }
  0x85   :  { %v374_v20 = vadd.f32 %v619_v17, %v158_v19  ;;  %v187_v21 = vpop.f32.mrf.mxu1 }
  0x86   :  { %v375_v22 = vadd.f32 %v621_v18, %v187_v21 }
  0x88   :  { %v406_v23 = vpack.c.bf16 %v375_v22, %v374_v20 }
  0x8a   :  { %422 = vst [vmem:[#allocation3] sm:$0xff] %v406_v23 }
  0x8b   :  { %v216_v26 = vpop.f32.mrf.mxu2 }
  0x8c   :  { %v376_v27 = vadd.f32 %v625_v24, %v216_v26  ;;  %v245_v28 = vpop.f32.mrf.mxu3  ;;  %v160_v29 = vpop.f32.mrf.mxu0 }
  0x8d   :  { %v377_v30 = vadd.f32 %v627_v25, %v245_v28  ;;  %v378_v31 = vadd.f32 %v619_v17, %v160_v29  ;;  %v189_v32 = vpop.f32.mrf.mxu1 }
  0x8e   :  { %v379_v33 = vadd.f32 %v621_v18, %v189_v32 }
  0x8f   :  { %v407_v34 = vpack.c.bf16 %v377_v30, %v376_v27 }
  0x90   :  { %v408_v35 = vpack.c.bf16 %v379_v33, %v378_v31 }
  0x91   :  { %423 = vst [vmem:[#allocation3 + $0x8] sm:$0xff] %v407_v34 }
  0x92   :  { %424 = vst [vmem:[#allocation3 + $0x10] sm:$0xff] %v408_v35 }
  0x93   :  { %v218_v36 = vpop.f32.mrf.mxu2 }
  0x94   :  { %v380_v37 = vadd.f32 %v625_v24, %v218_v36  ;;  %v247_v38 = vpop.f32.mrf.mxu3  ;;  %v163_v39 = vpop.f32.mrf.mxu0 }
  0x95   :  { %v381_v40 = vadd.f32 %v627_v25, %v247_v38  ;;  %v382_v41 = vadd.f32 %v619_v17, %v163_v39  ;;  %v192_v42 = vpop.f32.mrf.mxu1 }
  0x96   :  { %v383_v43 = vadd.f32 %v621_v18, %v192_v42 }
  0x97   :  { %v409_v44 = vpack.c.bf16 %v381_v40, %v380_v37 }
  0x98   :  { %v410_v45 = vpack.c.bf16 %v383_v43, %v382_v41 }
  0x99   :  { %425 = vst [vmem:[#allocation3 + $0x18] sm:$0xff] %v409_v44 }
  0x9a   :  { %426 = vst [vmem:[#allocation3 + $0x20] sm:$0xff] %v410_v45 }
  0x9b   :  { %v221_v46 = vpop.f32.mrf.mxu2 }
  0x9c   :  { %v384_v47 = vadd.f32 %v625_v24, %v221_v46  ;;  %v250_v48 = vpop.f32.mrf.mxu3  ;;  %v165_v49 = vpop.f32.mrf.mxu0 }
  0x9d   :  { %v385_v50 = vadd.f32 %v627_v25, %v250_v48  ;;  %v386_v51 = vadd.f32 %v619_v17, %v165_v49  ;;  %v194_v52 = vpop.f32.mrf.mxu1 }
  0x9e   :  { %v387_v53 = vadd.f32 %v621_v18, %v194_v52 }
  0x9f   :  { %v411_v54 = vpack.c.bf16 %v385_v50, %v384_v47 }
  0xa0   :  { %v412_v55 = vpack.c.bf16 %v387_v53, %v386_v51 }
  0xa1   :  { %427 = vst [vmem:[#allocation3 + $0x28] sm:$0xff] %v411_v54 }
  0xa2   :  { %428 = vst [vmem:[#allocation3 + $0x30] sm:$0xff] %v412_v55 }
  0xa3   :  { %v223_v56 = vpop.f32.mrf.mxu2 }
  0xa4   :  { %v388_v57 = vadd.f32 %v625_v24, %v223_v56  ;;  %v252_v58 = vpop.f32.mrf.mxu3  ;;  %v168_v59 = vpop.f32.mrf.mxu0 }
  0xa5   :  { %v389_v60 = vadd.f32 %v627_v25, %v252_v58  ;;  %v390_v61 = vadd.f32 %v619_v17, %v168_v59  ;;  %v197_v62 = vpop.f32.mrf.mxu1 }
  0xa6   :  { %v391_v63 = vadd.f32 %v621_v18, %v197_v62 }
  0xa7   :  { %v413_v0 = vpack.c.bf16 %v389_v60, %v388_v57 }
  0xa8   :  { %v414_v1 = vpack.c.bf16 %v391_v63, %v390_v61 }
  0xa9   :  { %429 = vst [vmem:[#allocation3 + $0x38] sm:$0xff] %v413_v0 }
  0xaa   :  { %430 = vst [vmem:[#allocation3 + $0x40] sm:$0xff] %v414_v1 }
  0xab   :  { %v226_v2 = vpop.f32.mrf.mxu2 }
  0xac   :  { %v392_v3 = vadd.f32 %v625_v24, %v226_v2  ;;  %v255_v4 = vpop.f32.mrf.mxu3  ;;  %v170_v5 = vpop.f32.mrf.mxu0 }
  0xad   :  { %v393_v6 = vadd.f32 %v627_v25, %v255_v4  ;;  %v394_v7 = vadd.f32 %v619_v17, %v170_v5  ;;  %v199_v8 = vpop.f32.mrf.mxu1 }
  0xae   :  { %v395_v9 = vadd.f32 %v621_v18, %v199_v8 }
  0xaf   :  { %v415_v10 = vpack.c.bf16 %v393_v6, %v392_v3 }
  0xb0   :  { %v416_v11 = vpack.c.bf16 %v395_v9, %v394_v7 }
  0xb1   :  { %431 = vst [vmem:[#allocation3 + $0x48] sm:$0xff] %v415_v10 }
  0xb2   :  { %432 = vst [vmem:[#allocation3 + $0x50] sm:$0xff] %v416_v11 }
  0xb3   :  { %v228_v12 = vpop.f32.mrf.mxu2 }
  0xb4   :  { %v396_v13 = vadd.f32 %v625_v24, %v228_v12  ;;  %v257_v14 = vpop.f32.mrf.mxu3  ;;  %v173_v15 = vpop.f32.mrf.mxu0 }
  0xb5   :  { %v397_v16 = vadd.f32 %v627_v25, %v257_v14  ;;  %v398_v19 = vadd.f32 %v619_v17, %v173_v15  ;;  %v202_v20 = vpop.f32.mrf.mxu1 }
  0xb6   :  { %v399_v21 = vadd.f32 %v621_v18, %v202_v20 }
  0xb7   :  { %v417_v22 = vpack.c.bf16 %v397_v16, %v396_v13 }
  0xb8   :  { %v418_v23 = vpack.c.bf16 %v399_v21, %v398_v19 }
  0xb9   :  { %433 = vst [vmem:[#allocation3 + $0x58] sm:$0xff] %v417_v22 }
  0xba   :  { %434 = vst [vmem:[#allocation3 + $0x60] sm:$0xff] %v418_v23 }
  0xbb   :  { %v231_v26 = vpop.f32.mrf.mxu2 }
  0xbc   :  { %v400_v27 = vadd.f32 %v625_v24, %v231_v26  ;;  %v260_v28 = vpop.f32.mrf.mxu3  ;;  %v175_v29 = vpop.f32.mrf.mxu0 }
  0xbd   :  { %v401_v30 = vadd.f32 %v627_v25, %v260_v28  ;;  %v402_v31 = vadd.f32 %v619_v17, %v175_v29  ;;  %v204_v32 = vpop.f32.mrf.mxu1 }
  0xbe   :  { %v403_v33 = vadd.f32 %v621_v18, %v204_v32 }
  0xbf   :  { %v419_v34 = vpack.c.bf16 %v401_v30, %v400_v27 }
  0xc0   :  { %v420_v35 = vpack.c.bf16 %v403_v33, %v402_v31 }
  0xc1   :  { %435 = vst [vmem:[#allocation3 + $0x68] sm:$0xff] %v419_v34 }
  0xc2   :  { %436 = vst [vmem:[#allocation3 + $0x70] sm:$0xff] %v420_v35 }
  0xc3   :  { %v233_v36 = vpop.f32.mrf.mxu2 }
  0xc4   :  { %v404_v37 = vadd.f32 %v625_v24, %v233_v36  ;;  %v262_v38 = vpop.f32.mrf.mxu3 }
  0xc5   :  { %v405_v39 = vadd.f32 %v627_v25, %v262_v38 }
  0xc7   :  { %v421_v17 = vpack.c.bf16 %v405_v39, %v404_v37 }
  0xc9   :  { %437 = vst [vmem:[#allocation3 + $0x78] sm:$0xff] %v421_v17 }
  0xca   :  { %450 = dma.vmem_to_hbm [thread:$0]  %s443_s2, 2048, %s445_s12, [#allocation4], %s542_s13, %s542_s13, %s543_s14  }
  0xcb   :  { %539 = dma.done.wait [#allocation4], 2048  }
  0xcc   :  { %540 = vsyncadd [#allocation4], 4294965248 }
  0xcd   :  { %455 = vsyncpa [#allocation4], 1 }

</bundles_post_ra>
